<compile_context>
chip_gen: v7x
topology: tpu7x:2x2x1
jax: 0.10.0
libtpu: 0.0.40
codegen_flags: <defaults>
</compile_context>

<pallas_src>
import functools

import jax
import jax.numpy as jnp
from jax import lax
from jax.experimental import pallas as pl
from jax.experimental.pallas import tpu as pltpu


def _round_up(a, b):
    return (a + b - 1) // b * b


def _vmem_budget_bytes():
    """Generation-aware VMEM budget: ~75% of physical, leaving compiler headroom."""
    try:
        cap = int(pltpu.get_tpu_info().vmem_capacity_bytes)
    except Exception:
        cap = 64 << 20          # assume the smallest generation (v7x) if query fails
    return max(cap * 3 // 4, 32 << 20), cap


def _rgcn_kernel_inplace(agg_ref, w_ref, b_ref, o_ref):
    """f32 output: accumulate directly into o_ref (no scratch), ReLU in place."""
    o_ref[...] = jnp.broadcast_to(b_ref[...], o_ref.shape)

    def body(r, carry):
        o_ref[...] += jnp.dot(agg_ref[r], w_ref[r],
                              preferred_element_type=jnp.float32)
        return carry

    lax.fori_loop(0, agg_ref.shape[0], body, 0, unroll=True)
    o_ref[...] = jnp.maximum(o_ref[...], 0.0)                      # ReLU


def _rgcn_kernel_scratch(agg_ref, w_ref, b_ref, o_ref, acc_ref):
    """non-f32 output: f32 accumulator scratch, ReLU + cast on the final store."""
    acc_ref[...] = jnp.broadcast_to(b_ref[...], acc_ref.shape)

    def body(r, carry):
        acc_ref[...] += jnp.dot(agg_ref[r], w_ref[r],
                                preferred_element_type=jnp.float32)
        return carry

    lax.fori_loop(0, agg_ref.shape[0], body, 0, unroll=True)
    o_ref[...] = jnp.maximum(acc_ref[...], 0.0).astype(o_ref.dtype)


def plain_rgcn_pallas(x, edge_index, edge_type, w_rel, w_root, bias,
                      num_relations, *, compute_dtype=jnp.bfloat16,
                      tile_m=512):
    """Forward of `Plain`: returns (ReLU(RGCNConv(x)), edge_index)."""
    N, C_in = x.shape
    C_out = w_root.shape[1]
    R = num_relations
    R1 = R + 1                                         # relations + root slot
    out_dtype = x.dtype
    out_is_f32 = jnp.dtype(out_dtype) == jnp.float32

    # ---- lane/sublane-friendly padding ----
    C_in_p = _round_up(C_in, 128)
    C_out_p = _round_up(C_out, 128)
    N8 = _round_up(N, 8)

    bpe = jnp.dtype(compute_dtype).itemsize
    out_bpe = jnp.dtype(out_dtype).itemsize
    budget, vmem_cap = _vmem_budget_bytes()

    def footprint(tm):
        return (2 * R1 * tm * C_in_p * bpe              # agg row tile (double-buffered)
                + 2 * R1 * C_in_p * C_out_p * bpe       # resident W stack (alloc x2)
                + 2 * C_out_p * 4                       # bias
                + 2 * tm * C_out_p * out_bpe            # output tile
                + (0 if out_is_f32 else tm * C_out_p * 4))   # acc scratch

    # Largest row tile (multiple of 8, <= tile_m, <= padded N) fitting the budget.
    TM = max(8, (min(tile_m, N8) // 8) * 8)
    while TM > 8 and footprint(TM) > budget:
        TM = max(8, ((TM // 2) // 8) * 8)
    # TODO(synk): if footprint(8) still exceeds the budget (huge R * Cin * Cout),
    # fall back to streaming W_rel[r] per relation instead of keeping it resident.

    N_p = _round_up(N, TM)
    # v7x megacore: give the "parallel" row axis >= 2 tiles so both TensorCores
    # get work; on single-TC v5e/v6e this only costs one extra ~0.35 us grid step.
    if N_p // TM < 2 and N8 >= 16:
        TM = max(8, _round_up((N8 + 1) // 2, 8))
        N_p = _round_up(N, TM)

    # ---- sparse glue: scatter-mean straight into the padded (R+1, N_p, C_in_p)
    # buffer (no separate pad copy).  Slot R carries the root features x, so the
    # kernel is a uniform sum_r agg[r] @ W[r] with W[R] = W_root.
    src = edge_index[0]
    dst = edge_index[1]
    x_pad = jnp.pad(x.astype(jnp.float32), ((0, 0), (0, C_in_p - C_in)))
    buf = jnp.zeros((R1, N_p, C_in_p), jnp.float32)
    buf = buf.at[R, :N, :].set(x_pad)                    # root slot
    buf = buf.at[edge_type, dst].add(x_pad[src])         # per-relation scatter-add
    counts = jnp.zeros((R, N_p), jnp.float32).at[edge_type, dst].add(1.0)
    inv = 1.0 / jnp.maximum(counts, 1.0)                 # isolated nodes -> 0
    scale = jnp.concatenate([inv, jnp.ones((1, N_p), jnp.float32)], axis=0)
    agg = (buf * scale[:, :, None]).astype(compute_dtype)  # fused scale + cast

    # ---- weights: fold W_root in as relation slot R; pad; cast for the MXU.
    w_stack = jnp.concatenate(
        [w_rel.astype(jnp.float32), w_root.astype(jnp.float32)[None]], axis=0)
    w_p = jnp.pad(w_stack, ((0, 0), (0, C_in_p - C_in),
                            (0, C_out_p - C_out))).astype(compute_dtype)
    bias_p = jnp.pad(bias.astype(jnp.float32),
                     (0, C_out_p - C_out)).reshape(1, C_out_p)

    fp = footprint(TM)
    vmem_limit = int(min(max(2 * fp, 32 << 20), int(vmem_cap * 0.9)))
    vmem_limit = max(vmem_limit, fp + (4 << 20))         # never below the footprint

    grid = (N_p // TM,)
    in_specs = [
        pl.BlockSpec((R1, TM, C_in_p), lambda i: (0, i, 0)),       # agg row tile (all rel)
        pl.BlockSpec((R1, C_in_p, C_out_p), lambda i: (0, 0, 0)),  # resident W stack
        pl.BlockSpec((1, C_out_p), lambda i: (0, 0)),              # bias
    ]
    out_spec = pl.BlockSpec((TM, C_out_p), lambda i: (i, 0))       # lane-dense output

    kernel = _rgcn_kernel_inplace if out_is_f32 else _rgcn_kernel_scratch
    scratch = [] if out_is_f32 else [pltpu.VMEM((TM, C_out_p), jnp.float32)]

    out_p = pl.pallas_call(
        kernel,
        out_shape=jax.ShapeDtypeStruct((N_p, C_out_p), out_dtype),
        grid_spec=pltpu.PrefetchScalarGridSpec(
            num_scalar_prefetch=0,
            grid=grid,
            in_specs=in_specs,
            out_specs=out_spec,
            scratch_shapes=scratch),
        compiler_params=pltpu.CompilerParams(
            dimension_semantics=("parallel",),
            vmem_limit_bytes=vmem_limit),
    )(agg, w_p, bias_p)

    out = out_p[:N, :C_out]
    return out, edge_index


def _reference(x, edge_index, edge_type, w_rel, w_root, bias, num_relations):
    """Pure-JAX reference of the same semantics (for correctness check)."""
    N = x.shape[0]
    src, dst = edge_index[0], edge_index[1]
    out = x @ w_root + bias
    for r in range(num_relations):
        m = (edge_type == r).astype(jnp.float32)
        counts = jnp.zeros((N, N)).at[dst, src].add(m)
        deg = counts.sum(axis=1, keepdims=True)
        adj_r = counts / jnp.maximum(deg, 1.0)
        out = out + (adj_r @ x) @ w_rel[r]
    return jnp.maximum(out, 0.0)


if __name__ == "__main__":
    # small, deterministic problem: 16 nodes, 32->32 channels, 3 relations, 40 edges
    N, C_IN, C_OUT, R, E = 16, 32, 32, 3, 40
    key = jax.random.PRNGKey(0)
    kx, ke, kt, kw, kr, kb = jax.random.split(key, 6)

    x = jax.random.normal(kx, (N, C_IN), jnp.float32)
    edge_index = jax.random.randint(ke, (2, E), 0, N, jnp.int32)
    edge_type = jax.random.randint(kt, (E,), 0, R, jnp.int32)

    # deterministic synthetic parameters (shapes per RGCNConv: weight (R, Cin, Cout),
    # root (Cin, Cout), bias (Cout,))
    w_rel = jax.random.normal(kw, (R, C_IN, C_OUT), jnp.float32) * 0.1
    w_root = jax.random.normal(kr, (C_IN, C_OUT), jnp.float32) * 0.1
    bias = jax.random.normal(kb, (C_OUT,), jnp.float32) * 0.1

    fwd = jax.jit(functools.partial(plain_rgcn_pallas, num_relations=R))
    out, ei_out = fwd(x, edge_index, edge_type, w_rel, w_root, bias)
    out = jax.block_until_ready(out)

    ref = _reference(x, edge_index, edge_type, w_rel, w_root, bias, R)
    assert out.shape == (N, C_OUT)
    assert ei_out.shape == (2, E)
    # bf16 MXU inputs with f32 accumulation -> looser tolerance than pure f32
    assert jnp.allclose(out, ref, atol=5e-2, rtol=5e-2), "mismatch vs reference"
    print("KERNEL_OK")
</pallas_src>

<mosaic_0001>
module attributes {stable_mosaic.version = 11 : i64} {
  func.func @_rgcn_kernel_inplace(%arg0: i32, %arg1: memref<4x8x128xbf16, #tpu.memory_space<vmem>>, %arg2: memref<4x128x128xbf16, #tpu.memory_space<vmem>>, %arg3: memref<1x128xf32, #tpu.memory_space<vmem>>, %arg4: memref<8x128xf32, #tpu.memory_space<vmem>>) attributes {dimension_semantics = [#tpu.dimension_semantics<parallel>], iteration_bounds = array<i64: 2>, scalar_prefetch = 0 : i64, scratch_operands = 0 : i64, tpu.core_type = #tpu.core_type<tc>, window_params = [{transform_indices = @transform_0, window_bounds = array<i64: 4, 8, 128>}, {pipeline_mode = #tpu.pipeline_mode<synchronous>, transform_indices = @transform_1, window_bounds = array<i64: 4, 128, 128>}, {pipeline_mode = #tpu.pipeline_mode<synchronous>, transform_indices = @transform_2, window_bounds = array<i64: 1, 128>}, {transform_indices = @transform_3, window_bounds = array<i64: 8, 128>}]} {
    %c0 = arith.constant 0 : index
    %c0_0 = arith.constant 0 : index
    %0 = vector.load %arg3[%c0, %c0_0] : memref<1x128xf32, #tpu.memory_space<vmem>>, vector<1x128xf32>
    %1 = vector.shape_cast %0 : vector<1x128xf32> to vector<1x128xf32>
    %2 = vector.broadcast %1 : vector<1x128xf32> to vector<8x128xf32>
    %c0_1 = arith.constant 0 : index
    %c0_2 = arith.constant 0 : index
    %3 = vector.load %arg4[%c0_1, %c0_2] : memref<8x128xf32, #tpu.memory_space<vmem>>, vector<8x128xf32>
    tpu.vector_store %arg4[%c0_1, %c0_2], %2 {strides = array<i32>} : memref<8x128xf32, #tpu.memory_space<vmem>>, vector<8x128xf32>,
    %c0_i32 = arith.constant 0 : i32
    %c0_3 = arith.constant 0 : index
    %c0_4 = arith.constant 0 : index
    %4 = vector.load %arg4[%c0_3, %c0_4] : memref<8x128xf32, #tpu.memory_space<vmem>>, vector<8x128xf32>
    %5 = arith.index_cast %c0_i32 : i32 to index
    %c0_5 = arith.constant 0 : index
    %c0_6 = arith.constant 0 : index
    %6 = vector.load %arg1[%5, %c0_5, %c0_6] : memref<4x8x128xbf16, #tpu.memory_space<vmem>>, vector<1x8x128xbf16>
    %7 = vector.shape_cast %6 : vector<1x8x128xbf16> to vector<8x128xbf16>
    %8 = arith.index_cast %c0_i32 : i32 to index
    %c0_7 = arith.constant 0 : index
    %c0_8 = arith.constant 0 : index
    %9 = vector.load %arg2[%8, %c0_7, %c0_8] : memref<4x128x128xbf16, #tpu.memory_space<vmem>>, vector<1x128x128xbf16>
    %10 = vector.shape_cast %9 : vector<1x128x128xbf16> to vector<128x128xbf16>
    %cst = arith.constant dense<0.000000e+00> : vector<8x128xf32>
    %11 = tpu.matmul %7, %10, %cst {dimension_numbers = #tpu.dot_dimension_numbers<[1], [0], [0], [1], [0, 0, 1, 1], [], []>} : vector<8x128xbf16>, vector<128x128xbf16>, vector<8x128xf32> -> vector<8x128xf32>
    %12 = arith.addf %4, %11 : vector<8x128xf32>
    %c0_9 = arith.constant 0 : index
    %c0_10 = arith.constant 0 : index
    %13 = vector.load %arg4[%c0_9, %c0_10] : memref<8x128xf32, #tpu.memory_space<vmem>>, vector<8x128xf32>
    tpu.vector_store %arg4[%c0_9, %c0_10], %12 {strides = array<i32>} : memref<8x128xf32, #tpu.memory_space<vmem>>, vector<8x128xf32>,
    %c1_i32 = arith.constant 1 : i32
    %c0_11 = arith.constant 0 : index
    %c0_12 = arith.constant 0 : index
    %14 = vector.load %arg4[%c0_11, %c0_12] : memref<8x128xf32, #tpu.memory_space<vmem>>, vector<8x128xf32>
    %15 = arith.index_cast %c1_i32 : i32 to index
    %c0_13 = arith.constant 0 : index
    %c0_14 = arith.constant 0 : index
    %16 = vector.load %arg1[%15, %c0_13, %c0_14] : memref<4x8x128xbf16, #tpu.memory_space<vmem>>, vector<1x8x128xbf16>
    %17 = vector.shape_cast %16 : vector<1x8x128xbf16> to vector<8x128xbf16>
    %18 = arith.index_cast %c1_i32 : i32 to index
    %c0_15 = arith.constant 0 : index
    %c0_16 = arith.constant 0 : index
    %19 = vector.load %arg2[%18, %c0_15, %c0_16] : memref<4x128x128xbf16, #tpu.memory_space<vmem>>, vector<1x128x128xbf16>
    %20 = vector.shape_cast %19 : vector<1x128x128xbf16> to vector<128x128xbf16>
    %cst_17 = arith.constant dense<0.000000e+00> : vector<8x128xf32>
    %21 = tpu.matmul %17, %20, %cst_17 {dimension_numbers = #tpu.dot_dimension_numbers<[1], [0], [0], [1], [0, 0, 1, 1], [], []>} : vector<8x128xbf16>, vector<128x128xbf16>, vector<8x128xf32> -> vector<8x128xf32>
    %22 = arith.addf %14, %21 : vector<8x128xf32>
    %c0_18 = arith.constant 0 : index
    %c0_19 = arith.constant 0 : index
    %23 = vector.load %arg4[%c0_18, %c0_19] : memref<8x128xf32, #tpu.memory_space<vmem>>, vector<8x128xf32>
    tpu.vector_store %arg4[%c0_18, %c0_19], %22 {strides = array<i32>} : memref<8x128xf32, #tpu.memory_space<vmem>>, vector<8x128xf32>,
    %c2_i32 = arith.constant 2 : i32
    %c0_20 = arith.constant 0 : index
    %c0_21 = arith.constant 0 : index
    %24 = vector.load %arg4[%c0_20, %c0_21] : memref<8x128xf32, #tpu.memory_space<vmem>>, vector<8x128xf32>
    %25 = arith.index_cast %c2_i32 : i32 to index
    %c0_22 = arith.constant 0 : index
    %c0_23 = arith.constant 0 : index
    %26 = vector.load %arg1[%25, %c0_22, %c0_23] : memref<4x8x128xbf16, #tpu.memory_space<vmem>>, vector<1x8x128xbf16>
    %27 = vector.shape_cast %26 : vector<1x8x128xbf16> to vector<8x128xbf16>
    %28 = arith.index_cast %c2_i32 : i32 to index
    %c0_24 = arith.constant 0 : index
    %c0_25 = arith.constant 0 : index
    %29 = vector.load %arg2[%28, %c0_24, %c0_25] : memref<4x128x128xbf16, #tpu.memory_space<vmem>>, vector<1x128x128xbf16>
    %30 = vector.shape_cast %29 : vector<1x128x128xbf16> to vector<128x128xbf16>
    %cst_26 = arith.constant dense<0.000000e+00> : vector<8x128xf32>
    %31 = tpu.matmul %27, %30, %cst_26 {dimension_numbers = #tpu.dot_dimension_numbers<[1], [0], [0], [1], [0, 0, 1, 1], [], []>} : vector<8x128xbf16>, vector<128x128xbf16>, vector<8x128xf32> -> vector<8x128xf32>
    %32 = arith.addf %24, %31 : vector<8x128xf32>
    %c0_27 = arith.constant 0 : index
    %c0_28 = arith.constant 0 : index
    %33 = vector.load %arg4[%c0_27, %c0_28] : memref<8x128xf32, #tpu.memory_space<vmem>>, vector<8x128xf32>
    tpu.vector_store %arg4[%c0_27, %c0_28], %32 {strides = array<i32>} : memref<8x128xf32, #tpu.memory_space<vmem>>, vector<8x128xf32>,
    %c3_i32 = arith.constant 3 : i32
    %c0_29 = arith.constant 0 : index
    %c0_30 = arith.constant 0 : index
    %34 = vector.load %arg4[%c0_29, %c0_30] : memref<8x128xf32, #tpu.memory_space<vmem>>, vector<8x128xf32>
    %35 = arith.index_cast %c3_i32 : i32 to index
    %c0_31 = arith.constant 0 : index
    %c0_32 = arith.constant 0 : index
    %36 = vector.load %arg1[%35, %c0_31, %c0_32] : memref<4x8x128xbf16, #tpu.memory_space<vmem>>, vector<1x8x128xbf16>
    %37 = vector.shape_cast %36 : vector<1x8x128xbf16> to vector<8x128xbf16>
    %38 = arith.index_cast %c3_i32 : i32 to index
    %c0_33 = arith.constant 0 : index
    %c0_34 = arith.constant 0 : index
    %39 = vector.load %arg2[%38, %c0_33, %c0_34] : memref<4x128x128xbf16, #tpu.memory_space<vmem>>, vector<1x128x128xbf16>
    %40 = vector.shape_cast %39 : vector<1x128x128xbf16> to vector<128x128xbf16>
    %cst_35 = arith.constant dense<0.000000e+00> : vector<8x128xf32>
    %41 = tpu.matmul %37, %40, %cst_35 {dimension_numbers = #tpu.dot_dimension_numbers<[1], [0], [0], [1], [0, 0, 1, 1], [], []>} : vector<8x128xbf16>, vector<128x128xbf16>, vector<8x128xf32> -> vector<8x128xf32>
    %42 = arith.addf %34, %41 : vector<8x128xf32>
    %c0_36 = arith.constant 0 : index
    %c0_37 = arith.constant 0 : index
    %43 = vector.load %arg4[%c0_36, %c0_37] : memref<8x128xf32, #tpu.memory_space<vmem>>, vector<8x128xf32>
    tpu.vector_store %arg4[%c0_36, %c0_37], %42 {strides = array<i32>} : memref<8x128xf32, #tpu.memory_space<vmem>>, vector<8x128xf32>,
    %c4_i32 = arith.constant 4 : i32
    %c0_38 = arith.constant 0 : index
    %c0_39 = arith.constant 0 : index
    %44 = vector.load %arg4[%c0_38, %c0_39] : memref<8x128xf32, #tpu.memory_space<vmem>>, vector<8x128xf32>
    %cst_40 = arith.constant 0.000000e+00 : f32
    %45 = vector.broadcast %cst_40 : f32 to vector<8x128xf32>
    %46 = arith.maximumf %44, %45 : vector<8x128xf32>
    %c0_41 = arith.constant 0 : index
    %c0_42 = arith.constant 0 : index
    %47 = vector.load %arg4[%c0_41, %c0_42] : memref<8x128xf32, #tpu.memory_space<vmem>>, vector<8x128xf32>
    tpu.vector_store %arg4[%c0_41, %c0_42], %46 {strides = array<i32>} : memref<8x128xf32, #tpu.memory_space<vmem>>, vector<8x128xf32>,
    return
  }
  func.func @transform_0(%arg0: i32) -> (i32, i32, i32) {
    %c0_i32 = arith.constant 0 : i32
    %c0_i32_0 = arith.constant 0 : i32
    %c0_i32_1 = arith.constant 0 : i32
    return %c0_i32, %arg0, %c0_i32_0 : i32, i32, i32
  }
  func.func @transform_1(%arg0: i32) -> (i32, i32, i32) {
    %c0_i32 = arith.constant 0 : i32
    %c0_i32_0 = arith.constant 0 : i32
    %c0_i32_1 = arith.constant 0 : i32
    %c0_i32_2 = arith.constant 0 : i32
    return %c0_i32, %c0_i32_0, %c0_i32_1 : i32, i32, i32
  }
  func.func @transform_2(%arg0: i32) -> (i32, i32) {
    %c0_i32 = arith.constant 0 : i32
    %c0_i32_0 = arith.constant 0 : i32
    %c0_i32_1 = arith.constant 0 : i32
    return %c0_i32, %c0_i32_0 : i32, i32
  }
  func.func @transform_3(%arg0: i32) -> (i32, i32) {
    %c0_i32 = arith.constant 0 : i32
    %c0_i32_0 = arith.constant 0 : i32
    return %arg0, %c0_i32 : i32, i32
  }
}

</mosaic_0001>

<bundles_post_ra>
// kernel: plain_rgcn_pallas.1
= control target key start
LH: loop header
LB: loop body
LE: loop exit
PB: predicated region body
PF: predicated region fallthrough
CT: control target
= control target key end

     0   :  { %8 = vsyncpa [#allocation4], 0  ;;  %s1392_s0 = inlined_call_operand.vmem [shape: bf16[4,16,128], index: 0, kind: input, shape index: {}]   ;;  %s1393_s1 = inlined_call_operand.vmem [shape: bf16[4,128,128], index: 1, kind: input, shape index: {}]   ;;  %s1394_s2 = inlined_call_operand.vmem [shape: f32[1,128], index: 2, kind: input, shape index: {}]   ;;  %s1395_s3 = inlined_call_operand.hbm [shape: f32[16,128], index: 3, kind: output, shape index: {}]  }
   0x1   :  { %10 = vsyncpa [#allocation4 + $0x1], 0  ;;  %s1137_s12 = smov 0   ;;  %s1139_s13 = smov 0  }
   0x2   :  { %s1141_s14 = smov 0   ;;  %s1143_s15 = smov 0  }
   0x3 LB: > { %s750_s16 = sadd.s32 4294967295, %s1112_s15   ;;  %s751_s17 = sadd.s32 4294967294, %s1112_s15   ;;  %s1112_s15 = sphi %s1143_s15, %s1401_s15   ;;  %s1108_s14 = sphi %s1141_s14, %s1400_s14   ;;  %s1104_s13 = sphi %s1139_s13, %s1399_s13   ;;  %s1100_s12 = sphi %s1137_s12, %s1398_s12  }
   0x4   : > { %s1160_s18 = sadd.s32 1, %s1112_s15   ;;  %s23_s19 = sadd.s32 1, %s1108_s14 }
   0x5   : > { %s20_s20 = ssub.s32 %s1112_s15, %s1160_s18  ;;  %p30_p0 = scmp.ne.s32.totalorder %s1108_s14, %s1104_s13 }
   0x6   : > { %p21_p1 = scmp.eq.s32.totalorder %s20_s20, 0  ;;  %p31_p2 = scmp.eq.s32.totalorder %s1112_s15, 0 }
   0x7   : > { %p102_p3 = scmp.eq.s32.totalorder %s750_s16, 1  ;;  %p107_p4 = scmp.ne.s32.totalorder %s1104_s13, %s1100_s12 }
   0x8   : > { %s1173_s21 = scalar_select %p21_p1, %s1108_s14, %s23_s19  }
   0x9   : > { %p32_p5 = por %p31_p2, %p30_p0  ;;  %p1175_p6 = por %p102_p3, %p30_p0 }
   0xa   : > { %p108_p7 = scmp.eq.s32.totalorder %s751_s17, 1  ;;  %p753_p9 = scmp.ge.s32.totalorder %s1112_s15, 2 }
   0xc   : > { %p1179_p8 = por %p108_p7, %p107_p4  ;;  %130 = sbr.rel (%p753_p9) target bundleno = 26 (0x1a), region = 24 }
  0x13   : > { %133 = sbr.rel (!%p32_p5) target bundleno = 26 (0x1a), region = 28  ;;  %s135_s24 = sand.u32 (%p32_p5), 1, %s1108_s14  }
  0x14   : > { %s755_s25 = sshll.u32 (%p32_p5), %s1112_s15, 2  ;;  %s754_s26 = sshll.u32 (%p32_p5), %s135_s24, 4 }
  0x15   : > { %s139_s29 = scalar_lea.vmem (%p32_p5), %s1392_s0, %s755_s25  ;;  %s137_s30 = scalar_lea.vmem (%p32_p5), [#allocation2], %s754_s26 }
  0x16   : > { %v155_v0 = vld [vmem:[%s139_s29] sm:$0xf] (%p32_p5)  ;;  %v157_v1 = vld [vmem:[%s139_s29 + $0x8] sm:$0xf] (%p32_p5)  ;;  %v159_v2 = vld [vmem:[%s139_s29 + $0x10] sm:$0xf] (%p32_p5) }
  0x17   : > { %156 = vst [vmem:[%s137_s30] sm:$0xf] (%p32_p5), %v155_v0  ;;  %158 = vst [vmem:[%s137_s30 + $0x4] sm:$0xf] (%p32_p5), %v157_v1  ;;  %v161_v3 = vld [vmem:[%s139_s29 + $0x18] sm:$0xf] (%p32_p5) }
  0x18   : > { %160 = vst [vmem:[%s137_s30 + $0x8] sm:$0xf] (%p32_p5), %v159_v2  ;;  %162 = vst [vmem:[%s137_s30 + $0xc] sm:$0xf] (%p32_p5), %v161_v3 }
  0x1a PF: > { %p756_p10 = scmp.ge.s32.totalorder %s1112_s15, 1  ;;  %p192_p11 = scmp.lt.s32.totalorder %s1112_s15, 3 }
  0x1c   : > { %p193_p12 = pnand %p756_p10, %p192_p11 }
  0x1d   : > { %v1018_v4 = vld [vmem:[%s1393_s1] sm:$0xff] (!%p193_p12)   ;;  %v1114_v5 = vmov (!%p193_p12), 0.0   ;;  %v1020_v7 = vld [vmem:[%s1393_s1 + $0x8] sm:$0xff] (!%p193_p12)   ;;  %vm1115_vm0 = vmmov (!%p193_p12), 0   ;;  %v1022_v9 = vld [vmem:[%s1393_s1 + $0x10] sm:$0xff] (!%p193_p12)   ;;  %s1245_s10 = sand.u32 (!%p193_p12), 1, %s1104_s13  }
  0x1e   : > { %196 = sbr.rel (%p193_p12) target bundleno = 326 (0x146), region = 69  ;;  %883 = vmatprep.subr.bf16.mxu1 (!%p193_p12), %v1114_v5  ;;  %923 = vmatprep.subr.bf16.mxu0 (!%p193_p12), %v1114_v5  ;;  %v1019_v6 = vld [vmem:[%s1393_s1 + $0x80] sm:$0xff] (!%p193_p12)   ;;  %v1021_v8 = vld [vmem:[%s1393_s1 + $0x88] sm:$0xff] (!%p193_p12)   ;;  %v1023_v10 = vld [vmem:[%s1393_s1 + $0x90] sm:$0xff] (!%p193_p12)   ;;  %s757_s19 = sshll.u32 (!%p193_p12), %s1245_s10, 4 }
  0x1f   : > { %884 = vmatpush3.bf16.msra.mxu1 (!%p193_p12), %v1018_v4  ;;  %899 = vmatprep.mubr.msk.bf16.mxu1 (!%p193_p12), %vm1115_vm0, %v1114_v5  ;;  %v1024_v11 = vld [vmem:[%s1393_s1 + $0x18] sm:$0xff] (!%p193_p12)   ;;  %v1026_v13 = vld [vmem:[%s1393_s1 + $0x20] sm:$0xff] (!%p193_p12)   ;;  %v1028_v15 = vld [vmem:[%s1393_s1 + $0x28] sm:$0xff] (!%p193_p12)   ;;  %s1265_s29 = scalar_lea.vmem (!%p193_p12), [#allocation2], %s757_s19  ;;  %s758_s30 = sshll.u32 (!%p193_p12), %s1245_s10, 3 }
  0x20   : > { %924 = vmatpush3.bf16.msra.mxu0 (!%p193_p12), %v1019_v6  ;;  %885 = vmatprep.subr.bf16.mxu1 (!%p193_p12), %v1114_v5  ;;  %v1025_v12 = vld [vmem:[%s1393_s1 + $0x98] sm:$0xff] (!%p193_p12)   ;;  %v1027_v14 = vld [vmem:[%s1393_s1 + $0xa0] sm:$0xff] (!%p193_p12)   ;;  %v1029_v16 = vld [vmem:[%s1393_s1 + $0xa8] sm:$0xff] (!%p193_p12)   ;;  %s844_s6 = sshll.u32 (!%p193_p12), %s750_s16, 7  ;;  %s221_s7 = scalar_lea.vmem (!%p193_p12), [#allocation3], %s758_s30 }
  0x21   : > { %925 = vmatprep.subr.bf16.mxu0 (!%p193_p12), %v1114_v5  ;;  %939 = vmatprep.mubr.msk.bf16.mxu0 (!%p193_p12), %vm1115_vm0, %v1114_v5  ;;  %v1030_v17 = vld [vmem:[%s1393_s1 + $0x30] sm:$0xff] (!%p193_p12)   ;;  %v1032_v19 = vld [vmem:[%s1393_s1 + $0x38] sm:$0xff] (!%p193_p12)   ;;  %v1034_v22 = vld [vmem:[%s1393_s1 + $0x40] sm:$0xff] (!%p193_p12)   ;;  %s686_s8 = sshll.u32 (!%p193_p12), %s221_s7, 4  ;;  %s1348_s11 = scalar_lea.hbm (!%p193_p12), %s1395_s3, %s844_s6  ;;  %s1350_s8 = int_to_ptr.vmem [resolvable:$true] %s686_s8 }
  0x22   : > { %v1031_v18 = vld [vmem:[%s1393_s1 + $0xb0] sm:$0xff] (!%p193_p12)   ;;  %v1033_v20 = vld [vmem:[%s1393_s1 + $0xb8] sm:$0xff] (!%p193_p12)   ;;  %v1035_v24 = vld [vmem:[%s1393_s1 + $0xc0] sm:$0xff] (!%p193_p12)   ;;  %s673_s17 = scalar_lea.sflag (!%p193_p12), [#allocation4], %s1245_s10  ;;  %s1050_s16 = scalar_lea.vmem (!%p193_p12), %s1350_s8, 128 }
  0x23   : > { %886 = vmatpush3.bf16.msra.mxu1 (!%p193_p12), %v1020_v7  ;;  %v232_v21 = vld [vmem:[%s1265_s29] sm:$0xf] (!%p193_p12)  ;;  %v793_v23 = vld [vmem:[%s1265_s29 + $0x8] sm:$0xf] (!%p193_p12)  ;;  %v768_v39 = vld [vmem:[%s1265_s29 + $0x4] sm:$0xf] (!%p193_p12)  ;;  %p1051_p13 = scmp.ne.s32.totalorder (!%p193_p12), %s1350_s8, %s1050_s16 }
  0x24   : > { %926 = vmatpush3.bf16.msra.mxu0 (!%p193_p12), %v1021_v8  ;;  %887 = vmatprep.subr.bf16.mxu1 (!%p193_p12), %v1114_v5  ;;  %v1036_v25 = vld [vmem:[%s1393_s1 + $0x48] sm:$0xff] (!%p193_p12)   ;;  %v1038_v27 = vld [vmem:[%s1393_s1 + $0x50] sm:$0xff] (!%p193_p12)   ;;  %v1040_v29 = vld [vmem:[%s1393_s1 + $0x58] sm:$0xff] (!%p193_p12)   ;;  %s1116_s19 = smov (!%p193_p12), [#allocation3]  }
  0x25   : > { %927 = vmatprep.subr.bf16.mxu0 %v1114_v5  ;;  %v1037_v26 = vld [vmem:[%s1393_s1 + $0xc8] sm:$0xff]   ;;  %v1039_v28 = vld [vmem:[%s1393_s1 + $0xd0] sm:$0xff]   ;;  %v1041_v30 = vld [vmem:[%s1393_s1 + $0xd8] sm:$0xff]   ;;  %p1052_p0 = pnand %p1051_p13, %p1175_p6  ;;  %s1054_s20 = sshll.u32 %s1116_s19, 4  ;;  %s1055_s20 = int_to_ptr.vmem [resolvable:$false] %s1054_s20 }
  0x26   : > { %v1042_v31 = vld [vmem:[%s1393_s1 + $0x60] sm:$0xff]   ;;  %v1044_v33 = vld [vmem:[%s1393_s1 + $0x68] sm:$0xff]   ;;  %v1046_v35 = vld [vmem:[%s1393_s1 + $0x70] sm:$0xff]   ;;  %s1056_s24 = scalar_lea.vmem %s1055_s20, 256  ;;  %p1057_p2 = scmp.lt.s32.totalorder %s1350_s8, %s1055_s20 }
  0x27   : > { %888 = vmatpush3.bf16.msra.mxu1 %v1022_v9  ;;  %v1043_v32 = vld [vmem:[%s1393_s1 + $0xe0] sm:$0xff]   ;;  %v1045_v34 = vld [vmem:[%s1393_s1 + $0xe8] sm:$0xff]   ;;  %v1047_v36 = vld [vmem:[%s1393_s1 + $0xf0] sm:$0xff]   ;;  %p1053_p1 = pneg %p1052_p0  ;;  %p1058_p3 = scmp.lt.s32.totalorder %s1056_s24, %s1050_s16 }
  0x28   : > { %928 = vmatpush3.bf16.msra.mxu0 %v1023_v10  ;;  %889 = vmatprep.subr.bf16.mxu1 %v1114_v5  ;;  %v1048_v37 = vld [vmem:[%s1393_s1 + $0x78] sm:$0xff]   ;;  %v759_v41 = vld [vmem:[%s1394_s2] ss:$0 sm:$0xff] }
  0x29   : > { %929 = vmatprep.subr.bf16.mxu0 %v1114_v5  ;;  %v1049_v38 = vld [vmem:[%s1393_s1 + $0xf8] sm:$0xff]   ;;  %p1059_p4 = por %p1058_p3, %p1057_p2 }
  0x2a   : > { %v818_v40 = vld [vmem:[%s1265_s29 + $0xc] sm:$0xf] }
  0x2b   : > { %890 = vmatpush3.bf16.msra.mxu1 %v1024_v11  ;;  %p1060_p5 = pnand %p1059_p4, %p1053_p1 }
  0x2c   : > { %930 = vmatpush3.bf16.msra.mxu0 %v1025_v12  ;;  %891 = vmatprep.subr.bf16.mxu1 %v1114_v5 }
  0x2d   : > { %931 = vmatprep.subr.bf16.mxu0 %v1114_v5 }
  0x2f   : > { %892 = vmatpush3.bf16.msra.mxu1 %v1026_v13 }
  0x30   : > { %932 = vmatpush3.bf16.msra.mxu0 %v1027_v14  ;;  %893 = vmatprep.subr.bf16.mxu1 %v1114_v5 }
  0x31   : > { %933 = vmatprep.subr.bf16.mxu0 %v1114_v5 }
  0x33   : > { %894 = vmatpush3.bf16.msra.mxu1 %v1028_v15 }
  0x34   : > { %934 = vmatpush3.bf16.msra.mxu0 %v1029_v16  ;;  %895 = vmatprep.subr.bf16.mxu1 %v1114_v5 }
  0x35   : > { %935 = vmatprep.subr.bf16.mxu0 %v1114_v5 }
  0x37   : > { %896 = vmatpush3.bf16.msra.mxu1 %v1030_v17 }
  0x38   : > { %936 = vmatpush3.bf16.msra.mxu0 %v1031_v18  ;;  %897 = vmatprep.subr.bf16.mxu1 %v1114_v5 }
  0x39   : > { %937 = vmatprep.subr.bf16.mxu0 %v1114_v5 }
  0x3b   : > { %898 = vmatpush3.bf16.msra.mxu1 %v1032_v19 }
  0x3c   : > { %938 = vmatpush3.bf16.msra.mxu0 %v1033_v20  ;;  %903 = vmatprep.subr.bf16.mxu1 %v1114_v5 }
  0x3d   : > { %943 = vmatprep.subr.bf16.mxu0 %v1114_v5 }
  0x3e   : > { %900 = vmatmul.mubr.bf16.vlgmr.msra.gmra.mrb[0].mxu1 %v232_v21 }
  0x3f   : > { %904 = vmatpush3.bf16.msra.mxu1 %v1034_v22  ;;  %940 = vmatmul.mubr.bf16.vlgmr.msra.gmra.mrb[0].mxu0 %v793_v23 }
  0x40   : > { %944 = vmatpush3.bf16.msra.mxu0 %v1035_v24  ;;  %905 = vmatprep.subr.bf16.mxu1 %v1114_v5 }
  0x41   : > { %945 = vmatprep.subr.bf16.mxu0 %v1114_v5  ;;  %919 = vmatprep.mubr.msk.bf16.mxu1 %vm1115_vm0, %v1114_v5 }
  0x42   : > { %959 = vmatprep.mubr.msk.bf16.mxu0 %vm1115_vm0, %v1114_v5 }
  0x43   : > { %906 = vmatpush3.bf16.msra.mxu1 %v1036_v25 }
  0x44   : > { %946 = vmatpush3.bf16.msra.mxu0 %v1037_v26  ;;  %907 = vmatprep.subr.bf16.mxu1 %v1114_v5 }
  0x45   : > { %947 = vmatprep.subr.bf16.mxu0 %v1114_v5 }
  0x47   : > { %908 = vmatpush3.bf16.msra.mxu1 %v1038_v27 }
  0x48   : > { %948 = vmatpush3.bf16.msra.mxu0 %v1039_v28  ;;  %909 = vmatprep.subr.bf16.mxu1 %v1114_v5 }
  0x49   : > { %949 = vmatprep.subr.bf16.mxu0 %v1114_v5 }
  0x4b   : > { %910 = vmatpush3.bf16.msra.mxu1 %v1040_v29 }
  0x4c   : > { %950 = vmatpush3.bf16.msra.mxu0 %v1041_v30  ;;  %911 = vmatprep.subr.bf16.mxu1 %v1114_v5 }
  0x4d   : > { %951 = vmatprep.subr.bf16.mxu0 %v1114_v5 }
  0x4f   : > { %912 = vmatpush3.bf16.msra.mxu1 %v1042_v31 }
  0x50   : > { %952 = vmatpush3.bf16.msra.mxu0 %v1043_v32  ;;  %913 = vmatprep.subr.bf16.mxu1 %v1114_v5 }
  0x51   : > { %953 = vmatprep.subr.bf16.mxu0 %v1114_v5 }
  0x53   : > { %914 = vmatpush3.bf16.msra.mxu1 %v1044_v33 }
  0x54   : > { %954 = vmatpush3.bf16.msra.mxu0 %v1045_v34  ;;  %915 = vmatprep.subr.bf16.mxu1 %v1114_v5 }
  0x55   : > { %955 = vmatprep.subr.bf16.mxu0 %v1114_v5 }
  0x57   : > { %916 = vmatpush3.bf16.msra.mxu1 %v1046_v35 }
  0x58   : > { %956 = vmatpush3.bf16.msra.mxu0 %v1047_v36  ;;  %917 = vmatprep.subr.bf16.mxu1 %v1114_v5 }
  0x59   : > { %957 = vmatprep.subr.bf16.mxu0 %v1114_v5 }
  0x5b   : > { %918 = vmatpush3.bf16.msra.mxu1 %v1048_v37 }
  0x5c   : > { %958 = vmatpush3.bf16.msra.mxu0 %v1049_v38 }
  0x5e   : > { %920 = vmatmul.mubr.bf16.vlgmr.msra.gmra.mrb[0].mxu1 %v768_v39 }
  0x5f   : > { %960 = vmatmul.mubr.bf16.vlgmr.msra.gmra.mrb[0].mxu0 %v818_v40 }
 0x131   : > { %v441_v42 = vpop.f32.mrb[0].mxu1 }
 0x132   : > { %v965_v43 = vadd.f32 %v759_v41, %v441_v42  ;;  %v661_v44 = vpop.f32.mrb[0].mxu0  ;;  %v921_v45 = vpop.f32.mrb[1].mxu1 }
 0x133   : > { %v961_v46 = vpop.f32.mrb[1].mxu0  ;;  %v444_v47 = vpop.f32.mrb[2].mxu1 }
 0x134   : > { %v968_v48 = vadd.f32 %v965_v43, %v661_v44  ;;  %v664_v49 = vpop.f32.mrb[2].mxu0  ;;  %v922_v50 = vpop.f32.mrb[3].mxu1 }
 0x135   : > { %v962_v51 = vpop.f32.mrb[3].mxu0 }
 0x136   : > { %v670_v52 = vmax.f32 %v968_v48, 0.0 }
 0x138   : > { %671 = vst [vmem:[%s221_s7] sm:$0xff] %v670_v52 }
 0x139   : > { %1063 = shalt.err (!%p1060_p5)
}
 0x13a   : > { %s1064_s10 = scalar_lea.hbm %s1348_s11, 128  ;;  %s1068_s27 = scalar_lea.hbm %s1395_s3, 256 }
 0x13b   : > { %p1065_p7 = scmp.ne.s32.totalorder %s1348_s11, %s1064_s10  ;;  %p1069_p12 = scmp.lt.u32.totalorder %s1348_s11, %s1395_s3 }
 0x13c   : > { %p1070_p13 = scmp.lt.u32.totalorder %s1068_s27, %s1064_s10  ;;  %p1072_p1 = scmp.lt.u32.totalorder %s1064_s10, %s1348_s11 }
 0x13d   : > { %p1066_p10 = pnand %p1065_p7, %p1175_p6 }
 0x13e   : > { %p1071_p0 = por %p1070_p13, %p1069_p12 }
 0x13f   : > { %p1067_p11 = pneg %p1066_p10 }
 0x140   : > { %p1073_p2 = por %p1072_p1, %p1071_p0 }
 0x142   : > { %p1074_p3 = pnand %p1073_p2, %p1067_p11 }
 0x144   : > { %1077 = shalt.err (!%p1074_p3)
}
 0x145   : > { %977 = dma.vmem_to_hbm [thread:$0]  (%p1175_p6), %s1350_s8, 128, %s1348_s11, %s673_s17  }
 0x146 PF: > { %s698_s4 = sand.u32 1, %s1100_s12   ;;  %p980_p4 = pnand %p753_p9, %p1179_p8 }
 0x147   : > { %s699_s5 = scalar_lea.sflag [#allocation4], %s698_s4 }
 0x148   : > { %1095 = dma.done.wait (!%p980_p4), %s699_s5, 128  }
 0x149   : > { %1097 = vsyncadd (!%p980_p4), %s699_s5, 4294967168  ;;  %p13_p5 = scmp.ge.s32.totalorder %s1160_s18, 4   ;;  %s1398_s12 = smov %s1104_s13 }
 0x14a   : > { %s1399_s13 = smov %s1108_s14  ;;  %s1400_s14 = smov %s1173_s21 }
 0x14b   : > { %s1401_s15 = smov %s1160_s18  ;;  %15 = sbr.rel (!%p13_p5) target bundleno = 3 (0x3), region = 119 }
 0x152   :  { %704 = vsyncpa [#allocation4], 1 }
 0x153   :  { %706 = vsyncpa [#allocation4 + $0x1], 1 }

</bundles_post_ra>
